<compile_context>
chip_gen: v6e
topology: v6e:2x2x1
jax: 0.10.0
libtpu: 0.0.40
codegen_flags: <defaults>
</compile_context>

<pallas_src>
import math

import jax
import jax.numpy as jnp
from jax.experimental import pallas as pl
from jax.experimental.pallas import tpu as pltpu


def _round_up(x, m):
    return ((x + m - 1) // m) * m


def _cdiv(a, b):
    return (a + b - 1) // b


# ---------------------------------------------------------------------------
# Exact (erf-based) GELU matching torch.nn.GELU() defaults.
# erf via Abramowitz & Stegun 7.1.26 (max abs err ~1.5e-7).  The 1/(1+p|z|)
# term uses the EUP approximate reciprocal plus one Newton-Raphson step so the
# divide never occupies the VALU slot; exp also issues on the EUP.
# ---------------------------------------------------------------------------
def _erf(z):
    a1, a2, a3, a4, a5 = (0.254829592, -0.284496736, 1.421413741,
                          -1.453152027, 1.061405429)
    p = 0.3275911
    sgn = jnp.where(z >= 0.0, 1.0, -1.0)
    az = jnp.abs(z)
    d = 1.0 + p * az
    t0 = pl.reciprocal(d, approx=True)      # EUP
    t = t0 * (2.0 - d * t0)                 # one NR step -> ~full f32 accuracy
    poly = ((((a5 * t + a4) * t + a3) * t + a2) * t + a1) * t
    return sgn * (1.0 - poly * jnp.exp(-az * az))


def _gelu_exact(h):
    return 0.5 * h * (1.0 + _erf(h * (1.0 / math.sqrt(2.0))))


def _mlp_kernel(x_ref, w1_ref, b1_ref, w2_ref, b2_ref, o_ref):
    # x:(TM,K) w1:(K,H) b1:(1,H) w2:(H,N) b2:(1,N) o:(TM,N)
    h = jnp.dot(x_ref[...], w1_ref[...], preferred_element_type=jnp.float32)
    h = _gelu_exact(h + b1_ref[...])
    h = h.astype(w2_ref.dtype)
    o = jnp.dot(h, w2_ref[...], preferred_element_type=jnp.float32)
    o_ref[...] = (o + b2_ref[...]).astype(o_ref.dtype)


# ---------------------------------------------------------------------------
# Parameter preparation (hoisted out of the per-call wrapper; call ONCE).
# ---------------------------------------------------------------------------
def prepare_mlp_params(w1, b1, w2, b2, *, compute_dtype=jnp.bfloat16):
    """Transpose / cast torch-layout Linear weights once; reuse every forward."""
    hidden, d_in = w1.shape
    d_out = w2.shape[0]
    assert w2.shape == (d_out, hidden)
    assert b1.shape == (hidden,) and b2.shape == (d_out,)
    return {
        "w1t": jnp.asarray(w1.T, dtype=compute_dtype),                 # (K, H)
        "b1": jnp.asarray(b1, dtype=jnp.float32).reshape(1, hidden),   # (1, H)
        "w2t": jnp.asarray(w2.T, dtype=compute_dtype),                 # (H, N)
        "b2": jnp.asarray(b2, dtype=jnp.float32).reshape(1, d_out),    # (1, N)
        "compute_dtype": jnp.dtype(compute_dtype),
    }


def _physical_vmem_bytes():
    try:
        info = pltpu.get_tpu_info()
        for attr in ("vmem_capacity_bytes", "vmem_bytes", "vmem_size_bytes"):
            v = getattr(info, attr, None)
            if v:
                return int(v)
    except Exception:
        pass
    return 64 * 1024 * 1024  # conservative: v7x per-TensorCore VMEM


_HAS_BUFFERED = hasattr(pl, "Buffered")


def _pick_tile_m(m, d_in, hidden, d_out, bytes_c, block_m, budget, single_buf):
    sub = 16 if bytes_c == 2 else 8        # sublane packing of compute dtype
    kp = _round_up(d_in, 128)
    hp = _round_up(hidden, 128)
    np_ = _round_up(d_out, 128)
    w_bufs = 1 if single_buf else 2
    weight_bytes = w_bufs * (
        (_round_up(d_in, sub) * hp + _round_up(hidden, sub) * np_) * bytes_c
        + 8 * (hp + np_) * 4)              # f32 biases, sublane-padded
    # Per-row VMEM: double-buffered x & f32 out tiles, live f32 intermediate +
    # GELU temporaries (~4 copies of (TM,Hp)), and the bf16 cast of h.
    per_row = 2 * kp * bytes_c + 2 * np_ * 4 + 4 * hp * 4 + hp * bytes_c
    # TODO(synk): K/N-tiled fallback when weight_bytes alone exceeds budget.
    cap = max(8, ((budget - weight_bytes) // max(per_row, 1) // 8) * 8)
    tm_cap = min(block_m, cap)
    if m <= tm_cap:
        return m                           # single full-dim row block (legal)
    # Balance tiles so the ragged last tile isn't mostly padded rows.
    n_tiles = _cdiv(m, tm_cap)
    tm = _round_up(_cdiv(m, n_tiles), 8)
    if tm > 128:                           # MXU-friendly 128-row multiples
        tm = min(_round_up(tm, 128), tm_cap)
    return max(8, tm)


def _const_spec(shape, single_buf):
    idx = lambda i: (0,) * len(shape)
    if single_buf:
        return pl.BlockSpec(shape, idx, pipeline_mode=pl.Buffered(1))
    return pl.BlockSpec(shape, idx)


def _build_call(m, d_in, hidden, d_out, tm, vmem_limit, single_buf):
    grid = (_cdiv(m, tm),)
    return pl.pallas_call(
        _mlp_kernel,
        out_shape=jax.ShapeDtypeStruct((m, d_out), jnp.float32),
        grid_spec=pltpu.PrefetchScalarGridSpec(
            num_scalar_prefetch=0,
            grid=grid,
            in_specs=[
                pl.BlockSpec((tm, d_in), lambda i: (i, 0)),   # x row tile
                _const_spec((d_in, hidden), single_buf),      # W1 resident
                _const_spec((1, hidden), single_buf),         # b1 resident
                _const_spec((hidden, d_out), single_buf),     # W2 resident
                _const_spec((1, d_out), single_buf),          # b2 resident
            ],
            out_specs=pl.BlockSpec((tm, d_out), lambda i: (i, 0)),
        ),
        compiler_params=pltpu.CompilerParams(
            dimension_semantics=("parallel",),
            vmem_limit_bytes=int(vmem_limit),
        ),
    )


def mlp_forward(x, params, *, block_m=512):
    """Fused MLP forward: x @ W1.T + b1 -> GELU -> @ W2.T + b2."""
    w1t, b1, w2t, b2 = params["w1t"], params["b1"], params["w2t"], params["b2"]
    compute_dtype = params["compute_dtype"]
    d_in, hidden = w1t.shape
    d_out = w2t.shape[1]
    orig_shape = x.shape
    assert orig_shape[-1] == d_in

    m = 1
    for s in orig_shape[:-1]:
        m *= s

    # No padded HBM copy of x; only a dtype cast when compute_dtype != f32.
    x2d = jnp.asarray(x, dtype=compute_dtype).reshape(m, d_in)

    bytes_c = jnp.dtype(compute_dtype).itemsize
    phys = _physical_vmem_bytes()
    budget = int(phys * 0.55)       # sizing budget (per-TensorCore on v7x)
    vmem_limit = int(phys * 0.75)
    tm = _pick_tile_m(m, d_in, hidden, d_out, bytes_c, block_m, budget,
                      _HAS_BUFFERED)

    def run(single_buf):
        call = _build_call(m, d_in, hidden, d_out, tm, vmem_limit, single_buf)
        return call(x2d, w1t, b1, w2t, b2)

    if _HAS_BUFFERED:
        try:
            out = run(True)
        except Exception:
            out = run(False)        # fallback: double-buffered resident weights
    else:
        out = run(False)

    return out.reshape(orig_shape[:-1] + (d_out,))


def _reference(x, w1, b1, w2, b2):
    """Pure-JAX reference mirroring torch: Linear -> GELU(exact) -> Linear."""
    h = x @ w1.T + b1
    h = jax.nn.gelu(h, approximate=False)
    return h @ w2.T + b2


if __name__ == "__main__":
    # Small shapes consistent with the module: batch=2, seq=8,
    # in_features=32, hidden_features=64, out_features=32.
    B, S = 2, 8
    in_features, hidden_features, out_features = 32, 64, 32

    key = jax.random.PRNGKey(0)
    kx, kw1, kb1, kw2, kb2 = jax.random.split(key, 5)

    x = jax.random.normal(kx, (B, S, in_features), dtype=jnp.float32)
    w1 = jax.random.normal(kw1, (hidden_features, in_features),
                           dtype=jnp.float32) * 0.05
    b1 = jax.random.normal(kb1, (hidden_features,), dtype=jnp.float32) * 0.01
    w2 = jax.random.normal(kw2, (out_features, hidden_features),
                           dtype=jnp.float32) * 0.05
    b2 = jax.random.normal(kb2, (out_features,), dtype=jnp.float32) * 0.01

    ref = _reference(x, w1, b1, w2, b2)

    # f32 compute path (tight tolerance vs. exact erf-GELU reference).
    params_f32 = prepare_mlp_params(w1, b1, w2, b2, compute_dtype=jnp.float32)
    out_f32 = jax.block_until_ready(mlp_forward(x, params_f32))
    assert out_f32.shape == (B, S, out_features), out_f32.shape
    assert jnp.allclose(out_f32, ref, atol=1e-3, rtol=1e-3), \
        "f32 mismatch vs reference"

    # Default bf16 compute path; params prepared once and reused across calls.
    params_bf16 = prepare_mlp_params(w1, b1, w2, b2)   # default bfloat16
    out_bf16 = jax.block_until_ready(mlp_forward(x, params_bf16))
    out_bf16_again = jax.block_until_ready(mlp_forward(x, params_bf16))
    assert out_bf16.shape == (B, S, out_features), out_bf16.shape
    assert jnp.allclose(out_bf16, ref, atol=5e-2, rtol=5e-2), \
        "bf16 mismatch vs reference"
    assert jnp.allclose(out_bf16, out_bf16_again), "non-deterministic reuse"

    print("KERNEL_OK")
</pallas_src>

<mosaic_0001>
module attributes {stable_mosaic.version = 11 : i64} {
  func.func @_mlp_kernel(%arg0: i32, %arg1: memref<16x32xf32, #tpu.memory_space<vmem>>, %arg2: memref<32x64xf32, #tpu.memory_space<vmem>>, %arg3: memref<1x64xf32, #tpu.memory_space<vmem>>, %arg4: memref<64x32xf32, #tpu.memory_space<vmem>>, %arg5: memref<1x32xf32, #tpu.memory_space<vmem>>, %arg6: memref<16x32xf32, #tpu.memory_space<vmem>>) attributes {dimension_semantics = [#tpu.dimension_semantics<parallel>], iteration_bounds = array<i64: 1>, scalar_prefetch = 0 : i64, scratch_operands = 0 : i64, tpu.core_type = #tpu.core_type<tc>, window_params = [{transform_indices = @transform_0, window_bounds = array<i64: 16, 32>}, {pipeline_mode = #tpu.pipeline_mode<synchronous>, transform_indices = @transform_1, window_bounds = array<i64: 32, 64>}, {pipeline_mode = #tpu.pipeline_mode<synchronous>, transform_indices = @transform_2, window_bounds = array<i64: 1, 64>}, {pipeline_mode = #tpu.pipeline_mode<synchronous>, transform_indices = @transform_3, window_bounds = array<i64: 64, 32>}, {pipeline_mode = #tpu.pipeline_mode<synchronous>, transform_indices = @transform_4, window_bounds = array<i64: 1, 32>}, {transform_indices = @transform_5, window_bounds = array<i64: 16, 32>}]} {
    %c0 = arith.constant 0 : index
    %c0_0 = arith.constant 0 : index
    %0 = vector.load %arg1[%c0, %c0_0] : memref<16x32xf32, #tpu.memory_space<vmem>>, vector<16x32xf32>
    %c0_1 = arith.constant 0 : index
    %c0_2 = arith.constant 0 : index
    %1 = vector.load %arg2[%c0_1, %c0_2] : memref<32x64xf32, #tpu.memory_space<vmem>>, vector<32x64xf32>
    %cst = arith.constant dense<0.000000e+00> : vector<16x64xf32>
    %2 = tpu.matmul %0, %1, %cst {dimension_numbers = #tpu.dot_dimension_numbers<[1], [0], [0], [1], [0, 0, 1, 1], [], []>} : vector<16x32xf32>, vector<32x64xf32>, vector<16x64xf32> -> vector<16x64xf32>
    %c0_3 = arith.constant 0 : index
    %c0_4 = arith.constant 0 : index
    %3 = vector.load %arg3[%c0_3, %c0_4] : memref<1x64xf32, #tpu.memory_space<vmem>>, vector<1x64xf32>
    %4 = vector.broadcast %3 : vector<1x64xf32> to vector<16x64xf32>
    %5 = arith.addf %2, %4 : vector<16x64xf32>
    %cst_5 = arith.constant 5.000000e-01 : f32
    %6 = vector.broadcast %cst_5 : f32 to vector<16x64xf32>
    %7 = arith.mulf %6, %5 : vector<16x64xf32>
    %cst_6 = arith.constant 0.707106769 : f32
    %8 = vector.broadcast %cst_6 : f32 to vector<16x64xf32>
    %9 = arith.mulf %5, %8 : vector<16x64xf32>
    %cst_7 = arith.constant 0.000000e+00 : f32
    %10 = vector.broadcast %cst_7 : f32 to vector<16x64xf32>
    %11 = arith.cmpf oge, %9, %10 : vector<16x64xf32>
    %cst_8 = arith.constant 1.000000e+00 : f32
    %cst_9 = arith.constant -1.000000e+00 : f32
    %12 = vector.broadcast %cst_8 : f32 to vector<16x64xf32>
    %13 = vector.broadcast %cst_9 : f32 to vector<16x64xf32>
    %14 = arith.select %11, %12, %13 : vector<16x64xi1>, vector<16x64xf32>
    %15 = math.absf %9 : vector<16x64xf32>
    %cst_10 = arith.constant 0.327591091 : f32
    %16 = vector.broadcast %cst_10 : f32 to vector<16x64xf32>
    %17 = arith.mulf %16, %15 : vector<16x64xf32>
    %cst_11 = arith.constant 1.000000e+00 : f32
    %18 = vector.broadcast %cst_11 : f32 to vector<16x64xf32>
    %19 = arith.addf %18, %17 : vector<16x64xf32>
    %20 = tpu.reciprocal %19 {approx = true} : vector<16x64xf32> -> vector<16x64xf32>
    %21 = arith.mulf %19, %20 : vector<16x64xf32>
    %cst_12 = arith.constant 2.000000e+00 : f32
    %22 = vector.broadcast %cst_12 : f32 to vector<16x64xf32>
    %23 = arith.subf %22, %21 : vector<16x64xf32>
    %24 = arith.mulf %20, %23 : vector<16x64xf32>
    %cst_13 = arith.constant 1.06140542 : f32
    %25 = vector.broadcast %cst_13 : f32 to vector<16x64xf32>
    %26 = arith.mulf %25, %24 : vector<16x64xf32>
    %cst_14 = arith.constant -1.45315206 : f32
    %27 = vector.broadcast %cst_14 : f32 to vector<16x64xf32>
    %28 = arith.addf %26, %27 : vector<16x64xf32>
    %29 = arith.mulf %28, %24 : vector<16x64xf32>
    %cst_15 = arith.constant 1.42141378 : f32
    %30 = vector.broadcast %cst_15 : f32 to vector<16x64xf32>
    %31 = arith.addf %29, %30 : vector<16x64xf32>
    %32 = arith.mulf %31, %24 : vector<16x64xf32>
    %cst_16 = arith.constant -0.284496725 : f32
    %33 = vector.broadcast %cst_16 : f32 to vector<16x64xf32>
    %34 = arith.addf %32, %33 : vector<16x64xf32>
    %35 = arith.mulf %34, %24 : vector<16x64xf32>
    %cst_17 = arith.constant 0.254829586 : f32
    %36 = vector.broadcast %cst_17 : f32 to vector<16x64xf32>
    %37 = arith.addf %35, %36 : vector<16x64xf32>
    %38 = arith.mulf %37, %24 : vector<16x64xf32>
    %cst_18 = arith.constant 0.000000e+00 : f32
    %39 = vector.broadcast %cst_18 : f32 to vector<16x64xf32>
    %40 = arith.subf %39, %15 : vector<16x64xf32>
    %41 = arith.mulf %40, %15 : vector<16x64xf32>
    %42 = math.exp %41 : vector<16x64xf32>
    %43 = arith.mulf %38, %42 : vector<16x64xf32>
    %cst_19 = arith.constant 1.000000e+00 : f32
    %44 = vector.broadcast %cst_19 : f32 to vector<16x64xf32>
    %45 = arith.subf %44, %43 : vector<16x64xf32>
    %46 = arith.mulf %14, %45 : vector<16x64xf32>
    %cst_20 = arith.constant 1.000000e+00 : f32
    %47 = vector.broadcast %cst_20 : f32 to vector<16x64xf32>
    %48 = arith.addf %47, %46 : vector<16x64xf32>
    %49 = arith.mulf %7, %48 : vector<16x64xf32>
    %c0_21 = arith.constant 0 : index
    %c0_22 = arith.constant 0 : index
    %50 = vector.load %arg4[%c0_21, %c0_22] : memref<64x32xf32, #tpu.memory_space<vmem>>, vector<64x32xf32>
    %cst_23 = arith.constant dense<0.000000e+00> : vector<16x32xf32>
    %51 = tpu.matmul %49, %50, %cst_23 {dimension_numbers = #tpu.dot_dimension_numbers<[1], [0], [0], [1], [0, 0, 1, 1], [], []>} : vector<16x64xf32>, vector<64x32xf32>, vector<16x32xf32> -> vector<16x32xf32>
    %c0_24 = arith.constant 0 : index
    %c0_25 = arith.constant 0 : index
    %52 = vector.load %arg5[%c0_24, %c0_25] : memref<1x32xf32, #tpu.memory_space<vmem>>, vector<1x32xf32>
    %53 = vector.broadcast %52 : vector<1x32xf32> to vector<16x32xf32>
    %54 = arith.addf %51, %53 : vector<16x32xf32>
    %c0_26 = arith.constant 0 : index
    %c0_27 = arith.constant 0 : index
    %55 = vector.load %arg6[%c0_26, %c0_27] : memref<16x32xf32, #tpu.memory_space<vmem>>, vector<16x32xf32>
    tpu.vector_store %arg6[%c0_26, %c0_27], %54 {strides = array<i32>} : memref<16x32xf32, #tpu.memory_space<vmem>>, vector<16x32xf32>,
    return
  }
  func.func @transform_0(%arg0: i32) -> (i32, i32) {
    %c0_i32 = arith.constant 0 : i32
    %c0_i32_0 = arith.constant 0 : i32
    return %arg0, %c0_i32 : i32, i32
  }
  func.func @transform_1(%arg0: i32) -> (i32, i32) {
    %c0_i32 = arith.constant 0 : i32
    %c0_i32_0 = arith.constant 0 : i32
    %c0_i32_1 = arith.constant 0 : i32
    return %c0_i32, %c0_i32_0 : i32, i32
  }
  func.func @transform_2(%arg0: i32) -> (i32, i32) {
    %c0_i32 = arith.constant 0 : i32
    %c0_i32_0 = arith.constant 0 : i32
    %c0_i32_1 = arith.constant 0 : i32
    return %c0_i32, %c0_i32_0 : i32, i32
  }
  func.func @transform_3(%arg0: i32) -> (i32, i32) {
    %c0_i32 = arith.constant 0 : i32
    %c0_i32_0 = arith.constant 0 : i32
    %c0_i32_1 = arith.constant 0 : i32
    return %c0_i32, %c0_i32_0 : i32, i32
  }
  func.func @transform_4(%arg0: i32) -> (i32, i32) {
    %c0_i32 = arith.constant 0 : i32
    %c0_i32_0 = arith.constant 0 : i32
    %c0_i32_1 = arith.constant 0 : i32
    return %c0_i32, %c0_i32_0 : i32, i32
  }
  func.func @transform_5(%arg0: i32) -> (i32, i32) {
    %c0_i32 = arith.constant 0 : i32
    %c0_i32_0 = arith.constant 0 : i32
    return %arg0, %c0_i32 : i32, i32
  }
}

module attributes {stable_mosaic.version = 11 : i64} {
  func.func @_mlp_kernel(%arg0: i32, %arg1: memref<16x32xf32, #tpu.memory_space<vmem>>, %arg2: memref<32x64xf32, #tpu.memory_space<vmem>>, %arg3: memref<1x64xf32, #tpu.memory_space<vmem>>, %arg4: memref<64x32xf32, #tpu.memory_space<vmem>>, %arg5: memref<1x32xf32, #tpu.memory_space<vmem>>, %arg6: memref<16x32xf32, #tpu.memory_space<vmem>>) attributes {dimension_semantics = [#tpu.dimension_semantics<parallel>], iteration_bounds = array<i64: 1>, scalar_prefetch = 0 : i64, scratch_operands = 0 : i64, tpu.core_type = #tpu.core_type<tc>, window_params = [{transform_indices = @transform_0, window_bounds = array<i64: 16, 32>}, {pipeline_mode = #tpu.pipeline_mode<synchronous>, transform_indices = @transform_1, window_bounds = array<i64: 32, 64>}, {pipeline_mode = #tpu.pipeline_mode<synchronous>, transform_indices = @transform_2, window_bounds = array<i64: 1, 64>}, {pipeline_mode = #tpu.pipeline_mode<synchronous>, transform_indices = @transform_3, window_bounds = array<i64: 64, 32>}, {pipeline_mode = #tpu.pipeline_mode<synchronous>, transform_indices = @transform_4, window_bounds = array<i64: 1, 32>}, {transform_indices = @transform_5, window_bounds = array<i64: 16, 32>}]} {
    %c0 = arith.constant 0 : index
    %c0_0 = arith.constant 0 : index
    %0 = vector.load %arg1[%c0, %c0_0] : memref<16x32xf32, #tpu.memory_space<vmem>>, vector<16x32xf32>
    %c0_1 = arith.constant 0 : index
    %c0_2 = arith.constant 0 : index
    %1 = vector.load %arg2[%c0_1, %c0_2] : memref<32x64xf32, #tpu.memory_space<vmem>>, vector<32x64xf32>
    %cst = arith.constant dense<0.000000e+00> : vector<16x64xf32>
    %2 = tpu.matmul %0, %1, %cst {dimension_numbers = #tpu.dot_dimension_numbers<[1], [0], [0], [1], [0, 0, 1, 1], [], []>} : vector<16x32xf32>, vector<32x64xf32>, vector<16x64xf32> -> vector<16x64xf32>
    %c0_3 = arith.constant 0 : index
    %c0_4 = arith.constant 0 : index
    %3 = vector.load %arg3[%c0_3, %c0_4] : memref<1x64xf32, #tpu.memory_space<vmem>>, vector<1x64xf32>
    %4 = vector.broadcast %3 : vector<1x64xf32> to vector<16x64xf32>
    %5 = arith.addf %2, %4 : vector<16x64xf32>
    %cst_5 = arith.constant 5.000000e-01 : f32
    %6 = vector.broadcast %cst_5 : f32 to vector<16x64xf32>
    %7 = arith.mulf %6, %5 : vector<16x64xf32>
    %cst_6 = arith.constant 0.707106769 : f32
    %8 = vector.broadcast %cst_6 : f32 to vector<16x64xf32>
    %9 = arith.mulf %5, %8 : vector<16x64xf32>
    %cst_7 = arith.constant 0.000000e+00 : f32
    %10 = vector.broadcast %cst_7 : f32 to vector<16x64xf32>
    %11 = arith.cmpf oge, %9, %10 : vector<16x64xf32>
    %cst_8 = arith.constant 1.000000e+00 : f32
    %cst_9 = arith.constant -1.000000e+00 : f32
    %12 = vector.broadcast %cst_8 : f32 to vector<16x64xf32>
    %13 = vector.broadcast %cst_9 : f32 to vector<16x64xf32>
    %14 = arith.select %11, %12, %13 : vector<16x64xi1>, vector<16x64xf32>
    %15 = math.absf %9 : vector<16x64xf32>
    %cst_10 = arith.constant 0.327591091 : f32
    %16 = vector.broadcast %cst_10 : f32 to vector<16x64xf32>
    %17 = arith.mulf %16, %15 : vector<16x64xf32>
    %cst_11 = arith.constant 1.000000e+00 : f32
    %18 = vector.broadcast %cst_11 : f32 to vector<16x64xf32>
    %19 = arith.addf %18, %17 : vector<16x64xf32>
    %20 = tpu.reciprocal %19 {approx = true} : vector<16x64xf32> -> vector<16x64xf32>
    %21 = arith.mulf %19, %20 : vector<16x64xf32>
    %cst_12 = arith.constant 2.000000e+00 : f32
    %22 = vector.broadcast %cst_12 : f32 to vector<16x64xf32>
    %23 = arith.subf %22, %21 : vector<16x64xf32>
    %24 = arith.mulf %20, %23 : vector<16x64xf32>
    %cst_13 = arith.constant 1.06140542 : f32
    %25 = vector.broadcast %cst_13 : f32 to vector<16x64xf32>
    %26 = arith.mulf %25, %24 : vector<16x64xf32>
    %cst_14 = arith.constant -1.45315206 : f32
    %27 = vector.broadcast %cst_14 : f32 to vector<16x64xf32>
    %28 = arith.addf %26, %27 : vector<16x64xf32>
    %29 = arith.mulf %28, %24 : vector<16x64xf32>
    %cst_15 = arith.constant 1.42141378 : f32
    %30 = vector.broadcast %cst_15 : f32 to vector<16x64xf32>
    %31 = arith.addf %29, %30 : vector<16x64xf32>
    %32 = arith.mulf %31, %24 : vector<16x64xf32>
    %cst_16 = arith.constant -0.284496725 : f32
    %33 = vector.broadcast %cst_16 : f32 to vector<16x64xf32>
    %34 = arith.addf %32, %33 : vector<16x64xf32>
    %35 = arith.mulf %34, %24 : vector<16x64xf32>
    %cst_17 = arith.constant 0.254829586 : f32
    %36 = vector.broadcast %cst_17 : f32 to vector<16x64xf32>
    %37 = arith.addf %35, %36 : vector<16x64xf32>
    %38 = arith.mulf %37, %24 : vector<16x64xf32>
    %cst_18 = arith.constant 0.000000e+00 : f32
    %39 = vector.broadcast %cst_18 : f32 to vector<16x64xf32>
    %40 = arith.subf %39, %15 : vector<16x64xf32>
    %41 = arith.mulf %40, %15 : vector<16x64xf32>
    %42 = math.exp %41 : vector<16x64xf32>
    %43 = arith.mulf %38, %42 : vector<16x64xf32>
    %cst_19 = arith.constant 1.000000e+00 : f32
    %44 = vector.broadcast %cst_19 : f32 to vector<16x64xf32>
    %45 = arith.subf %44, %43 : vector<16x64xf32>
    %46 = arith.mulf %14, %45 : vector<16x64xf32>
    %cst_20 = arith.constant 1.000000e+00 : f32
    %47 = vector.broadcast %cst_20 : f32 to vector<16x64xf32>
    %48 = arith.addf %47, %46 : vector<16x64xf32>
    %49 = arith.mulf %7, %48 : vector<16x64xf32>
    %c0_21 = arith.constant 0 : index
    %c0_22 = arith.constant 0 : index
    %50 = vector.load %arg4[%c0_21, %c0_22] : memref<64x32xf32, #tpu.memory_space<vmem>>, vector<64x32xf32>
    %cst_23 = arith.constant dense<0.000000e+00> : vector<16x32xf32>
    %51 = tpu.matmul %49, %50, %cst_23 {dimension_numbers = #tpu.dot_dimension_numbers<[1], [0], [0], [1], [0, 0, 1, 1], [], []>} : vector<16x64xf32>, vector<64x32xf32>, vector<16x32xf32> -> vector<16x32xf32>
    %c0_24 = arith.constant 0 : index
    %c0_25 = arith.constant 0 : index
    %52 = vector.load %arg5[%c0_24, %c0_25] : memref<1x32xf32, #tpu.memory_space<vmem>>, vector<1x32xf32>
    %53 = vector.broadcast %52 : vector<1x32xf32> to vector<16x32xf32>
    %54 = arith.addf %51, %53 : vector<16x32xf32>
    %c0_26 = arith.constant 0 : index
    %c0_27 = arith.constant 0 : index
    %55 = vector.load %arg6[%c0_26, %c0_27] : memref<16x32xf32, #tpu.memory_space<vmem>>, vector<16x32xf32>
    tpu.vector_store %arg6[%c0_26, %c0_27], %54 {strides = array<i32>} : memref<16x32xf32, #tpu.memory_space<vmem>>, vector<16x32xf32>,
    return
  }
  func.func @transform_0(%arg0: i32) -> (i32, i32) {
    %c0_i32 = arith.constant 0 : i32
    %c0_i32_0 = arith.constant 0 : i32
    return %arg0, %c0_i32 : i32, i32
  }
  func.func @transform_1(%arg0: i32) -> (i32, i32) {
    %c0_i32 = arith.constant 0 : i32
    %c0_i32_0 = arith.constant 0 : i32
    %c0_i32_1 = arith.constant 0 : i32
    return %c0_i32, %c0_i32_0 : i32, i32
  }
  func.func @transform_2(%arg0: i32) -> (i32, i32) {
    %c0_i32 = arith.constant 0 : i32
    %c0_i32_0 = arith.constant 0 : i32
    %c0_i32_1 = arith.constant 0 : i32
    return %c0_i32, %c0_i32_0 : i32, i32
  }
  func.func @transform_3(%arg0: i32) -> (i32, i32) {
    %c0_i32 = arith.constant 0 : i32
    %c0_i32_0 = arith.constant 0 : i32
    %c0_i32_1 = arith.constant 0 : i32
    return %c0_i32, %c0_i32_0 : i32, i32
  }
  func.func @transform_4(%arg0: i32) -> (i32, i32) {
    %c0_i32 = arith.constant 0 : i32
    %c0_i32_0 = arith.constant 0 : i32
    %c0_i32_1 = arith.constant 0 : i32
    return %c0_i32, %c0_i32_0 : i32, i32
  }
  func.func @transform_5(%arg0: i32) -> (i32, i32) {
    %c0_i32 = arith.constant 0 : i32
    %c0_i32_0 = arith.constant 0 : i32
    return %arg0, %c0_i32 : i32, i32
  }
}

</mosaic_0001>

<bundles_post_ra>
// kernel: tpu_custom_call.1
= control target key start
LH: loop header
LB: loop body
LE: loop exit
PB: predicated region body
PF: predicated region fallthrough
CT: control target
= control target key end

     0   :  { %vm34_vm0 = vcmask 261120   ;;  %s464_s0 = inlined_call_operand.vmem [shape: f32[16,32], index: 0, kind: input, shape index: {}]   ;;  %s465_s1 = inlined_call_operand.vmem [shape: f32[32,64], index: 1, kind: input, shape index: {}]   ;;  %s466_s2 = inlined_call_operand.vmem [shape: f32[1,64], index: 2, kind: input, shape index: {}]   ;;  %s467_s3 = inlined_call_operand.vmem [shape: f32[64,32], index: 3, kind: input, shape index: {}]   ;;  %s468_s4 = inlined_call_operand.vmem [shape: f32[1,32], index: 4, kind: input, shape index: {}]   ;;  %s469_s5 = inlined_call_operand.hbm [shape: f32[16,32], index: 5, kind: output, shape index: {}]  }
   0x1   :  { %v26_v0 = vld [vmem:[%s465_s1 + $0x18] sm:$0xff]  ;;  %v25_v1 = vld [vmem:[%s465_s1 + $0x10] sm:$0xff]  ;;  %v21_v2 = vld [vmem:[%s464_s0] sm:$0xff] }
   0x2   :  { %311 = vmatprep.subr.mxu0 %v26_v0  ;;  %v24_v3 = vld [vmem:[%s465_s1 + $0x8] sm:$0xff]  ;;  %319 = vmatprep.mubr.msk.f32.mxu0 %vm34_vm0, %v21_v2 }
   0x3   :  { %312 = vmatpush3.msra.mxu0 %v26_v0 }
   0x4   :  { %10 = vsyncpa [#allocation3], 0  ;;  %313 = vmatprep.subr.mxu0 %v25_v1  ;;  %v23_v4 = vld [vmem:[%s465_s1] sm:$0xff]  ;;  %v22_v5 = vld [vmem:[%s464_s0 + $0x8] sm:$0xff]  ;;  %v375_v63 = vmov -1.0   ;;  %vm189_vm3 = vcmask 523264  }
   0x5   :  { %314 = vmatpush3.msra.mxu0 %v25_v1  ;;  %v181_v6 = vld [vmem:[%s467_s3 + $0x38] sm:$0xff]  ;;  %v180_v7 = vld [vmem:[%s467_s3 + $0x30] sm:$0xff]  ;;  %v179_v8 = vld [vmem:[%s467_s3 + $0x28] sm:$0xff]  ;;  %s376_s21 = smov [#allocation2]  }
   0x6   :  { %315 = vmatprep.subr.mxu0 %v24_v3  ;;  %322 = vmatprep.subr.mxu1 %v181_v6  ;;  %v178_v9 = vld [vmem:[%s467_s3 + $0x20] sm:$0xff]  ;;  %v177_v10 = vld [vmem:[%s467_s3 + $0x18] sm:$0xff]  ;;  %v176_v11 = vld [vmem:[%s467_s3 + $0x10] sm:$0xff]  ;;  %s278_s22 = sshll.u32 %s376_s21, 4  ;;  %s279_s22 = int_to_ptr.vmem [resolvable:$true] %s278_s22 }
   0x7   :  { %316 = vmatpush3.msra.mxu0 %v24_v3  ;;  %323 = vmatpush3.msra.mxu1 %v181_v6  ;;  %v175_v12 = vld [vmem:[%s467_s3 + $0x8] sm:$0xff]  ;;  %v174_v13 = vld [vmem:[%s467_s3] sm:$0xff]  ;;  %s353_s23 = scalar_lea.vmem %s279_s22, 256  ;;  %p358_p1 = scmp.lt.s32.totalorder %s279_s22, %s279_s22 }
   0x8   :  { %317 = vmatprep.subr.mxu0 %v23_v4  ;;  %324 = vmatprep.subr.mxu1 %v180_v7  ;;  %v289_v14 = vld [vmem:[%s466_s2] ss:$0 sm:$0xff]  ;;  %p354_p0 = scmp.ne.s32.totalorder %s279_s22, %s353_s23  ;;  %p359_p2 = scmp.lt.s32.totalorder %s353_s23, %s353_s23 }
   0x9   :  { %318 = vmatpush3.msra.mxu0 %v23_v4  ;;  %325 = vmatpush3.msra.mxu1 %v180_v7 }
   0xa   :  { %320 = vmatmul.mubr.msk.f32.vlgmr.msra.gmra.mxu0 %vm34_vm0, %v22_v5  ;;  %326 = vmatprep.subr.mxu1 %v179_v8  ;;  %p360_p3 = por %p359_p2, %p358_p1 }
   0xb   :  { %327 = vmatpush3.msra.mxu1 %v179_v8 }
   0xc   :  { %328 = vmatprep.subr.mxu1 %v178_v9  ;;  %p361_p4 = pnand %p360_p3, %p354_p0 }
   0xd   :  { %329 = vmatpush3.msra.mxu1 %v178_v9 }
   0xe   :  { %330 = vmatprep.subr.mxu1 %v177_v10 }
   0xf   :  { %331 = vmatpush3.msra.mxu1 %v177_v10 }
  0x10   :  { %332 = vmatprep.subr.mxu1 %v176_v11 }
  0x11   :  { %333 = vmatpush3.msra.mxu1 %v176_v11 }
  0x12   :  { %334 = vmatprep.subr.mxu1 %v175_v12 }
  0x13   :  { %335 = vmatpush3.msra.mxu1 %v175_v12  ;;  %v292_v12 = vld [vmem:[%s468_s4] ss:$0 sm:$0xff] }
  0x14   :  { %336 = vmatprep.subr.mxu1 %v174_v13 }
  0x15   :  { %337 = vmatpush3.msra.mxu1 %v174_v13 }
  0xca   :  { %v321_v15 = vpop.f32.mrf.mxu0 }
  0xcb   :  { %v113_v16 = vadd.f32 %v321_v15, %v289_v14 }
  0xcc   :  { %v107_v17 = vpop.f32.mrf.mxu0 }
  0xcd   :  { %v119_v18 = vmul.f32 0.70710677, %v113_v16  ;;  %v108_v19 = vadd.f32 %v289_v14, %v107_v17  ;;  %v117_v9 = vmul.f32 0.5, %v113_v16 }
  0xcf   :  { %v125_v20 = vand.u32 2147483647, %v119_v18  ;;  %v118_v21 = vmul.f32 0.70710677, %v108_v19  ;;  %vm121_vm1 = vcmp.ge.f32.partialorder %v119_v18, 0.0  ;;  %v116_v7 = vmul.f32 0.5, %v108_v19 }
  0xd0   :  { %v123_v0 = vsel %vm121_vm1, 1.0, %v375_v63 }
  0xd1   :  { %v127_v22 = vmul.f32 0.3275911, %v125_v20  ;;  %v124_v23 = vand.u32 2147483647, %v118_v21  ;;  %v157_v27 = vsub.f32 0.0, %v125_v20  ;;  %vm120_vm2 = vcmp.ge.f32.partialorder %v118_v21, 0.0 }
  0xd2   :  { %v122_v4 = vsel %vm120_vm2, 1.0, %v375_v63 }
  0xd3   :  { %v129_v24 = vadd.f32 1.0, %v127_v22  ;;  %v126_v25 = vmul.f32 0.3275911, %v124_v23  ;;  %v156_v30 = vsub.f32 0.0, %v124_v23  ;;  %v159_v33 = vmul.f32 %v157_v27, %v125_v20 }
  0xd5   :  { %345 = vrcp.f32 %v129_v24  ;;  %v128_v26 = vadd.f32 1.0, %v126_v25  ;;  %v158_v37 = vmul.f32 %v156_v30, %v124_v23  ;;  %v162_v39 = vmul.f32 1.442695, %v159_v33 }
  0xd7   :  { %347 = vrcp.f32 %v128_v26  ;;  %v160_v42 = vmul.f32 1.442695, %v158_v37 }
  0xd8   :  { %349 = vpow2.f32 %v162_v39 }
  0xd9   :  { %351 = vpow2.f32 %v160_v42 }
  0xe2   :  { %v346_v28 = vpop.eup %345 }
  0xe3   :  { %v133_v29 = vmul.f32 %v346_v28, %v129_v24 }
  0xe4   :  { %v348_v31 = vpop.eup %347 }
  0xe5   :  { %v135_v32 = vsub.f32 2.0, %v133_v29  ;;  %v132_v34 = vmul.f32 %v348_v31, %v128_v26  ;;  %v350_v57 = vpop.eup %349 }
  0xe6   :  { %v352_v61 = vpop.eup %351 }
  0xe7   :  { %v137_v35 = vmul.f32 %v346_v28, %v135_v32  ;;  %v134_v36 = vsub.f32 2.0, %v132_v34 }
  0xe9   :  { %v139_v38 = vmul.f32 1.0614054, %v137_v35  ;;  %v136_v40 = vmul.f32 %v348_v31, %v134_v36 }
  0xeb   :  { %v141_v41 = vadd.f32 -1.4531521, %v139_v38  ;;  %v138_v43 = vmul.f32 1.0614054, %v136_v40 }
  0xed   :  { %v143_v44 = vmul.f32 %v141_v41, %v137_v35  ;;  %v140_v45 = vadd.f32 -1.4531521, %v138_v43 }
  0xef   :  { %v145_v46 = vadd.f32 1.4214138, %v143_v44  ;;  %v142_v47 = vmul.f32 %v140_v45, %v136_v40 }
  0xf1   :  { %v147_v48 = vmul.f32 %v145_v46, %v137_v35  ;;  %v144_v49 = vadd.f32 1.4214138, %v142_v47 }
  0xf3   :  { %v149_v50 = vadd.f32 -0.28449672, %v147_v48  ;;  %v146_v51 = vmul.f32 %v144_v49, %v136_v40 }
  0xf5   :  { %v151_v52 = vmul.f32 %v149_v50, %v137_v35  ;;  %v148_v53 = vadd.f32 -0.28449672, %v146_v51 }
  0xf7   :  { %v153_v54 = vadd.f32 0.2548296, %v151_v52  ;;  %v150_v55 = vmul.f32 %v148_v53, %v136_v40 }
  0xf9   :  { %v155_v56 = vmul.f32 %v153_v54, %v137_v35  ;;  %v152_v58 = vadd.f32 0.2548296, %v150_v55 }
  0xfb   :  { %v165_v59 = vmul.f32 %v350_v57, %v155_v56  ;;  %v154_v60 = vmul.f32 %v152_v58, %v136_v40 }
  0xfd   :  { %v167_v62 = vsub.f32 1.0, %v165_v59  ;;  %v164_v1 = vmul.f32 %v352_v61, %v154_v60 }
  0xff   :  { %v169_v2 = vmul.f32 %v167_v62, %v123_v0  ;;  %v166_v3 = vsub.f32 1.0, %v164_v1 }
 0x101   :  { %v168_v5 = vmul.f32 %v166_v3, %v122_v4  ;;  %v171_v6 = vadd.f32 1.0, %v169_v2 }
 0x103   :  { %v170_v8 = vadd.f32 1.0, %v168_v5  ;;  %v173_v11 = vmul.f32 %v171_v6, %v117_v9 }
 0x105   :  { %v172_v10 = vmul.f32 %v170_v8, %v116_v7 }
 0x107   :  { %338 = vmatprep.mubr.msk.f32.mxu1 %vm189_vm3, %v172_v10 }
 0x108   :  { %339 = vmatmul.mubr.msk.f32.vlgmr.msra.gmra.mxu1 %vm189_vm3, %v173_v11 }
 0x1c8   :  { %v340_v13 = vpop.f32.mrf.mxu1 }
 0x1c9   :  { %v268_v14 = vadd.f32 %v340_v13, %v292_v12 }
 0x1ca   :  { %v262_v15 = vpop.f32.mrf.mxu1 }
 0x1cb   :  { %272 = vst.msk [vmem:[#allocation2 + $0x8] sm:$0xff] %vm34_vm0, %v268_v14  ;;  %v263_v17 = vadd.f32 %v292_v12, %v262_v15 }
 0x1cd   :  { %271 = vst.msk [vmem:[#allocation2] sm:$0xff] %vm34_vm0, %v263_v17 }
 0x1ce   :  { %364 = shalt.err (!%p361_p4)
}
 0x1cf   :  { %s377_s24 = smov 128   ;;  %s378_s4 = smov 8  }
 0x1d0   :  { %284 = dma.vmem_to_hbm [thread:$0]  %s279_s22, 256, %s469_s5, [#allocation3], %s377_s24, %s377_s24, %s378_s4  }
 0x1d1   :  { %373 = dma.done.wait [#allocation3], 256  }
 0x1d2   :  { %374 = vsyncadd [#allocation3], 4294967040 }
 0x1d3   :  { %288 = vsyncpa [#allocation3], 1 }

// kernel: tpu_custom_call.1
= control target key start
LH: loop header
LB: loop body
LE: loop exit
PB: predicated region body
PF: predicated region fallthrough
CT: control target
= control target key end

     0   :  { %vm34_vm0 = vcmask 261120   ;;  %s464_s0 = inlined_call_operand.vmem [shape: f32[16,32], index: 0, kind: input, shape index: {}]   ;;  %s465_s1 = inlined_call_operand.vmem [shape: f32[32,64], index: 1, kind: input, shape index: {}]   ;;  %s466_s2 = inlined_call_operand.vmem [shape: f32[1,64], index: 2, kind: input, shape index: {}]   ;;  %s467_s3 = inlined_call_operand.vmem [shape: f32[64,32], index: 3, kind: input, shape index: {}]   ;;  %s468_s4 = inlined_call_operand.vmem [shape: f32[1,32], index: 4, kind: input, shape index: {}]   ;;  %s469_s5 = inlined_call_operand.hbm [shape: f32[16,32], index: 5, kind: output, shape index: {}]  }
   0x1   :  { %v26_v0 = vld [vmem:[%s465_s1 + $0x18] sm:$0xff]  ;;  %v25_v1 = vld [vmem:[%s465_s1 + $0x10] sm:$0xff]  ;;  %v21_v2 = vld [vmem:[%s464_s0] sm:$0xff] }
   0x2   :  { %311 = vmatprep.subr.mxu0 %v26_v0  ;;  %v24_v3 = vld [vmem:[%s465_s1 + $0x8] sm:$0xff]  ;;  %319 = vmatprep.mubr.msk.f32.mxu0 %vm34_vm0, %v21_v2 }
   0x3   :  { %312 = vmatpush3.msra.mxu0 %v26_v0 }
   0x4   :  { %10 = vsyncpa [#allocation3], 0  ;;  %313 = vmatprep.subr.mxu0 %v25_v1  ;;  %v23_v4 = vld [vmem:[%s465_s1] sm:$0xff]  ;;  %v22_v5 = vld [vmem:[%s464_s0 + $0x8] sm:$0xff]  ;;  %v375_v63 = vmov -1.0   ;;  %vm189_vm3 = vcmask 523264  }
   0x5   :  { %314 = vmatpush3.msra.mxu0 %v25_v1  ;;  %v181_v6 = vld [vmem:[%s467_s3 + $0x38] sm:$0xff]  ;;  %v180_v7 = vld [vmem:[%s467_s3 + $0x30] sm:$0xff]  ;;  %v179_v8 = vld [vmem:[%s467_s3 + $0x28] sm:$0xff]  ;;  %s376_s21 = smov [#allocation2]  }
   0x6   :  { %315 = vmatprep.subr.mxu0 %v24_v3  ;;  %322 = vmatprep.subr.mxu1 %v181_v6  ;;  %v178_v9 = vld [vmem:[%s467_s3 + $0x20] sm:$0xff]  ;;  %v177_v10 = vld [vmem:[%s467_s3 + $0x18] sm:$0xff]  ;;  %v176_v11 = vld [vmem:[%s467_s3 + $0x10] sm:$0xff]  ;;  %s278_s22 = sshll.u32 %s376_s21, 4  ;;  %s279_s22 = int_to_ptr.vmem [resolvable:$true] %s278_s22 }
   0x7   :  { %316 = vmatpush3.msra.mxu0 %v24_v3  ;;  %323 = vmatpush3.msra.mxu1 %v181_v6  ;;  %v175_v12 = vld [vmem:[%s467_s3 + $0x8] sm:$0xff]  ;;  %v174_v13 = vld [vmem:[%s467_s3] sm:$0xff]  ;;  %s353_s23 = scalar_lea.vmem %s279_s22, 256  ;;  %p358_p1 = scmp.lt.s32.totalorder %s279_s22, %s279_s22 }
   0x8   :  { %317 = vmatprep.subr.mxu0 %v23_v4  ;;  %324 = vmatprep.subr.mxu1 %v180_v7  ;;  %v289_v14 = vld [vmem:[%s466_s2] ss:$0 sm:$0xff]  ;;  %p354_p0 = scmp.ne.s32.totalorder %s279_s22, %s353_s23  ;;  %p359_p2 = scmp.lt.s32.totalorder %s353_s23, %s353_s23 }
   0x9   :  { %318 = vmatpush3.msra.mxu0 %v23_v4  ;;  %325 = vmatpush3.msra.mxu1 %v180_v7 }
   0xa   :  { %320 = vmatmul.mubr.msk.f32.vlgmr.msra.gmra.mxu0 %vm34_vm0, %v22_v5  ;;  %326 = vmatprep.subr.mxu1 %v179_v8  ;;  %p360_p3 = por %p359_p2, %p358_p1 }
   0xb   :  { %327 = vmatpush3.msra.mxu1 %v179_v8 }
   0xc   :  { %328 = vmatprep.subr.mxu1 %v178_v9  ;;  %p361_p4 = pnand %p360_p3, %p354_p0 }
   0xd   :  { %329 = vmatpush3.msra.mxu1 %v178_v9 }
   0xe   :  { %330 = vmatprep.subr.mxu1 %v177_v10 }
   0xf   :  { %331 = vmatpush3.msra.mxu1 %v177_v10 }
  0x10   :  { %332 = vmatprep.subr.mxu1 %v176_v11 }
  0x11   :  { %333 = vmatpush3.msra.mxu1 %v176_v11 }
  0x12   :  { %334 = vmatprep.subr.mxu1 %v175_v12 }
  0x13   :  { %335 = vmatpush3.msra.mxu1 %v175_v12  ;;  %v292_v12 = vld [vmem:[%s468_s4] ss:$0 sm:$0xff] }
  0x14   :  { %336 = vmatprep.subr.mxu1 %v174_v13 }
  0x15   :  { %337 = vmatpush3.msra.mxu1 %v174_v13 }
  0xca   :  { %v321_v15 = vpop.f32.mrf.mxu0 }
  0xcb   :  { %v113_v16 = vadd.f32 %v321_v15, %v289_v14 }
  0xcc   :  { %v107_v17 = vpop.f32.mrf.mxu0 }
  0xcd   :  { %v119_v18 = vmul.f32 0.70710677, %v113_v16  ;;  %v108_v19 = vadd.f32 %v289_v14, %v107_v17  ;;  %v117_v9 = vmul.f32 0.5, %v113_v16 }
  0xcf   :  { %v125_v20 = vand.u32 2147483647, %v119_v18  ;;  %v118_v21 = vmul.f32 0.70710677, %v108_v19  ;;  %vm121_vm1 = vcmp.ge.f32.partialorder %v119_v18, 0.0  ;;  %v116_v7 = vmul.f32 0.5, %v108_v19 }
  0xd0   :  { %v123_v0 = vsel %vm121_vm1, 1.0, %v375_v63 }
  0xd1   :  { %v127_v22 = vmul.f32 0.3275911, %v125_v20  ;;  %v124_v23 = vand.u32 2147483647, %v118_v21  ;;  %v157_v27 = vsub.f32 0.0, %v125_v20  ;;  %vm120_vm2 = vcmp.ge.f32.partialorder %v118_v21, 0.0 }
  0xd2   :  { %v122_v4 = vsel %vm120_vm2, 1.0, %v375_v63 }
  0xd3   :  { %v129_v24 = vadd.f32 1.0, %v127_v22  ;;  %v126_v25 = vmul.f32 0.3275911, %v124_v23  ;;  %v156_v30 = vsub.f32 0.0, %v124_v23  ;;  %v159_v33 = vmul.f32 %v157_v27, %v125_v20 }
  0xd5   :  { %345 = vrcp.f32 %v129_v24  ;;  %v128_v26 = vadd.f32 1.0, %v126_v25  ;;  %v158_v37 = vmul.f32 %v156_v30, %v124_v23  ;;  %v162_v39 = vmul.f32 1.442695, %v159_v33 }
  0xd7   :  { %347 = vrcp.f32 %v128_v26  ;;  %v160_v42 = vmul.f32 1.442695, %v158_v37 }
  0xd8   :  { %349 = vpow2.f32 %v162_v39 }
  0xd9   :  { %351 = vpow2.f32 %v160_v42 }
  0xe2   :  { %v346_v28 = vpop.eup %345 }
  0xe3   :  { %v133_v29 = vmul.f32 %v346_v28, %v129_v24 }
  0xe4   :  { %v348_v31 = vpop.eup %347 }
  0xe5   :  { %v135_v32 = vsub.f32 2.0, %v133_v29  ;;  %v132_v34 = vmul.f32 %v348_v31, %v128_v26  ;;  %v350_v57 = vpop.eup %349 }
  0xe6   :  { %v352_v61 = vpop.eup %351 }
  0xe7   :  { %v137_v35 = vmul.f32 %v346_v28, %v135_v32  ;;  %v134_v36 = vsub.f32 2.0, %v132_v34 }
  0xe9   :  { %v139_v38 = vmul.f32 1.0614054, %v137_v35  ;;  %v136_v40 = vmul.f32 %v348_v31, %v134_v36 }
  0xeb   :  { %v141_v41 = vadd.f32 -1.4531521, %v139_v38  ;;  %v138_v43 = vmul.f32 1.0614054, %v136_v40 }
  0xed   :  { %v143_v44 = vmul.f32 %v141_v41, %v137_v35  ;;  %v140_v45 = vadd.f32 -1.4531521, %v138_v43 }
  0xef   :  { %v145_v46 = vadd.f32 1.4214138, %v143_v44  ;;  %v142_v47 = vmul.f32 %v140_v45, %v136_v40 }
  0xf1   :  { %v147_v48 = vmul.f32 %v145_v46, %v137_v35  ;;  %v144_v49 = vadd.f32 1.4214138, %v142_v47 }
  0xf3   :  { %v149_v50 = vadd.f32 -0.28449672, %v147_v48  ;;  %v146_v51 = vmul.f32 %v144_v49, %v136_v40 }
  0xf5   :  { %v151_v52 = vmul.f32 %v149_v50, %v137_v35  ;;  %v148_v53 = vadd.f32 -0.28449672, %v146_v51 }
  0xf7   :  { %v153_v54 = vadd.f32 0.2548296, %v151_v52  ;;  %v150_v55 = vmul.f32 %v148_v53, %v136_v40 }
  0xf9   :  { %v155_v56 = vmul.f32 %v153_v54, %v137_v35  ;;  %v152_v58 = vadd.f32 0.2548296, %v150_v55 }
  0xfb   :  { %v165_v59 = vmul.f32 %v350_v57, %v155_v56  ;;  %v154_v60 = vmul.f32 %v152_v58, %v136_v40 }
  0xfd   :  { %v167_v62 = vsub.f32 1.0, %v165_v59  ;;  %v164_v1 = vmul.f32 %v352_v61, %v154_v60 }
  0xff   :  { %v169_v2 = vmul.f32 %v167_v62, %v123_v0  ;;  %v166_v3 = vsub.f32 1.0, %v164_v1 }
 0x101   :  { %v168_v5 = vmul.f32 %v166_v3, %v122_v4  ;;  %v171_v6 = vadd.f32 1.0, %v169_v2 }
 0x103   :  { %v170_v8 = vadd.f32 1.0, %v168_v5  ;;  %v173_v11 = vmul.f32 %v171_v6, %v117_v9 }
 0x105   :  { %v172_v10 = vmul.f32 %v170_v8, %v116_v7 }
 0x107   :  { %338 = vmatprep.mubr.msk.f32.mxu1 %vm189_vm3, %v172_v10 }
 0x108   :  { %339 = vmatmul.mubr.msk.f32.vlgmr.msra.gmra.mxu1 %vm189_vm3, %v173_v11 }
 0x1c8   :  { %v340_v13 = vpop.f32.mrf.mxu1 }
 0x1c9   :  { %v268_v14 = vadd.f32 %v340_v13, %v292_v12 }
 0x1ca   :  { %v262_v15 = vpop.f32.mrf.mxu1 }
 0x1cb   :  { %272 = vst.msk [vmem:[#allocation2 + $0x8] sm:$0xff] %vm34_vm0, %v268_v14  ;;  %v263_v17 = vadd.f32 %v292_v12, %v262_v15 }
 0x1cd   :  { %271 = vst.msk [vmem:[#allocation2] sm:$0xff] %vm34_vm0, %v263_v17 }
 0x1ce   :  { %364 = shalt.err (!%p361_p4)
}
 0x1cf   :  { %s377_s24 = smov 128   ;;  %s378_s4 = smov 8  }
 0x1d0   :  { %284 = dma.vmem_to_hbm [thread:$0]  %s279_s22, 256, %s469_s5, [#allocation3], %s377_s24, %s377_s24, %s378_s4  }
 0x1d1   :  { %373 = dma.done.wait [#allocation3], 256  }
 0x1d2   :  { %374 = vsyncadd [#allocation3], 4294967040 }
 0x1d3   :  { %288 = vsyncpa [#allocation3], 1 }

</bundles_post_ra>
